<compile_context>
chip_gen: v7x
topology: tpu7x:2x2x1
jax: 0.10.0
libtpu: 0.0.40
codegen_flags: <defaults>
</compile_context>

<pallas_src>
import jax
import jax.numpy as jnp
from jax.experimental import pallas as pl
from jax.experimental.pallas import tpu as pltpu

LN_EPS = 1e-12


def self_output_kernel(hs_ref, res_ref, w_ref, b_ref, g_ref, beta_ref, o_ref):
    # hs_ref / res_ref / o_ref: (TM, H) token tile;  w_ref: (H, H);  b/g/beta: (1, H)
    h = jnp.dot(hs_ref[...], w_ref[...], preferred_element_type=jnp.float32)
    x = h + b_ref[...] + res_ref[...]                 # dense bias + residual
    # BERTLayerNorm: TF style (epsilon inside the square root)
    u = jnp.mean(x, axis=-1, keepdims=True)
    s = jnp.mean((x - u) * (x - u), axis=-1, keepdims=True)
    o_ref[...] = g_ref[...] * ((x - u) * jax.lax.rsqrt(s + LN_EPS)) + beta_ref[...]


def bert_self_output(hidden_states, input_tensor, w, b, gamma, beta, *, tm=8):
    """hidden_states / input_tensor: (B, S, H).

    w: (H, H) dense weight in (in_features, out_features) layout, i.e. already
    transposed relative to PyTorch's nn.Linear (out, in) weight."""
    B, S, H = hidden_states.shape
    T = B * S
    hs2 = hidden_states.reshape(T, H).astype(jnp.float32)
    res2 = input_tensor.reshape(T, H).astype(jnp.float32)
    b2 = b.reshape(1, H).astype(jnp.float32)
    g2 = gamma.reshape(1, H).astype(jnp.float32)
    be2 = beta.reshape(1, H).astype(jnp.float32)

    out = pl.pallas_call(
        self_output_kernel,
        out_shape=jax.ShapeDtypeStruct((T, H), jnp.float32),
        grid_spec=pltpu.PrefetchScalarGridSpec(
            num_scalar_prefetch=0,
            grid=(pl.cdiv(T, tm),),
            in_specs=[
                pl.BlockSpec((tm, H), lambda i: (i, 0)),   # hidden_states tile
                pl.BlockSpec((tm, H), lambda i: (i, 0)),   # residual tile
                pl.BlockSpec((H, H), lambda i: (0, 0)),    # dense weight (in, out)
                pl.BlockSpec((1, H), lambda i: (0, 0)),    # dense bias
                pl.BlockSpec((1, H), lambda i: (0, 0)),    # LayerNorm gamma
                pl.BlockSpec((1, H), lambda i: (0, 0)),    # LayerNorm beta
            ],
            out_specs=pl.BlockSpec((tm, H), lambda i: (i, 0)),
        ),
        compiler_params=pltpu.CompilerParams(
            dimension_semantics=("parallel",)),            # token tiles across TCs (v7x)
    )(hs2, res2, w.astype(jnp.float32), b2, g2, be2)
    return out.reshape(B, S, H)


def _reference(hidden_states, input_tensor, w, b, gamma, beta):
    h = jnp.einsum('bsh,hk->bsk', hidden_states, w) + b
    x = h + input_tensor
    u = jnp.mean(x, axis=-1, keepdims=True)
    s = jnp.mean((x - u) ** 2, axis=-1, keepdims=True)
    return gamma * ((x - u) / jnp.sqrt(s + LN_EPS)) + beta


if __name__ == "__main__":
    B, S, H = 2, 8, 128          # hidden_size = 128 keeps the last dim lane-dense
    key = jax.random.PRNGKey(0)
    k1, k2, k3, k4, k5 = jax.random.split(key, 5)

    hidden_states = jax.random.normal(k1, (B, S, H), jnp.float32)
    input_tensor = jax.random.normal(k2, (B, S, H), jnp.float32)
    # nn.Linear init: weight ~ N(0, 0.02) (stored here as (in, out)), bias zeros.
    w = 0.02 * jax.random.normal(k3, (H, H), jnp.float32)
    b = jnp.zeros((H,), jnp.float32)
    # BERTLayerNorm defaults: gamma = ones, beta = zeros (perturbed slightly so the
    # affine part of LayerNorm is actually exercised).
    gamma = 1.0 + 0.01 * jax.random.normal(k4, (H,), jnp.float32)
    beta = 0.01 * jax.random.normal(k5, (H,), jnp.float32)

    out = bert_self_output(hidden_states, input_tensor, w, b, gamma, beta)
    jax.block_until_ready(out)

    ref = _reference(hidden_states, input_tensor, w, b, gamma, beta)
    assert out.shape == (B, S, H)
    assert jnp.allclose(out, ref, atol=5e-3, rtol=5e-3), float(jnp.max(jnp.abs(out - ref)))
    print("KERNEL_OK")
</pallas_src>

<mosaic_0001>
module attributes {stable_mosaic.version = 11 : i64} {
  func.func @self_output_kernel(%arg0: i32, %arg1: memref<8x128xf32, #tpu.memory_space<vmem>>, %arg2: memref<8x128xf32, #tpu.memory_space<vmem>>, %arg3: memref<128x128xf32, #tpu.memory_space<vmem>>, %arg4: memref<1x128xf32, #tpu.memory_space<vmem>>, %arg5: memref<1x128xf32, #tpu.memory_space<vmem>>, %arg6: memref<1x128xf32, #tpu.memory_space<vmem>>, %arg7: memref<8x128xf32, #tpu.memory_space<vmem>>) attributes {dimension_semantics = [#tpu.dimension_semantics<parallel>], iteration_bounds = array<i64: 2>, scalar_prefetch = 0 : i64, scratch_operands = 0 : i64, tpu.core_type = #tpu.core_type<tc>, window_params = [{transform_indices = @transform_0, window_bounds = array<i64: 8, 128>}, {transform_indices = @transform_1, window_bounds = array<i64: 8, 128>}, {pipeline_mode = #tpu.pipeline_mode<synchronous>, transform_indices = @transform_2, window_bounds = array<i64: 128, 128>}, {pipeline_mode = #tpu.pipeline_mode<synchronous>, transform_indices = @transform_3, window_bounds = array<i64: 1, 128>}, {pipeline_mode = #tpu.pipeline_mode<synchronous>, transform_indices = @transform_4, window_bounds = array<i64: 1, 128>}, {pipeline_mode = #tpu.pipeline_mode<synchronous>, transform_indices = @transform_5, window_bounds = array<i64: 1, 128>}, {transform_indices = @transform_6, window_bounds = array<i64: 8, 128>}]} {
    %c0 = arith.constant 0 : index
    %c0_0 = arith.constant 0 : index
    %0 = vector.load %arg1[%c0, %c0_0] : memref<8x128xf32, #tpu.memory_space<vmem>>, vector<8x128xf32>
    %c0_1 = arith.constant 0 : index
    %c0_2 = arith.constant 0 : index
    %1 = vector.load %arg3[%c0_1, %c0_2] : memref<128x128xf32, #tpu.memory_space<vmem>>, vector<128x128xf32>
    %cst = arith.constant dense<0.000000e+00> : vector<8x128xf32>
    %2 = tpu.matmul %0, %1, %cst {dimension_numbers = #tpu.dot_dimension_numbers<[1], [0], [0], [1], [0, 0, 1, 1], [], []>} : vector<8x128xf32>, vector<128x128xf32>, vector<8x128xf32> -> vector<8x128xf32>
    %c0_3 = arith.constant 0 : index
    %c0_4 = arith.constant 0 : index
    %3 = vector.load %arg4[%c0_3, %c0_4] : memref<1x128xf32, #tpu.memory_space<vmem>>, vector<1x128xf32>
    %4 = vector.broadcast %3 : vector<1x128xf32> to vector<8x128xf32>
    %5 = arith.addf %2, %4 : vector<8x128xf32>
    %c0_5 = arith.constant 0 : index
    %c0_6 = arith.constant 0 : index
    %6 = vector.load %arg2[%c0_5, %c0_6] : memref<8x128xf32, #tpu.memory_space<vmem>>, vector<8x128xf32>
    %7 = arith.addf %5, %6 : vector<8x128xf32>
    %cst_7 = arith.constant dense<0.000000e+00> : vector<8xf32>
    %8 = vector.multi_reduction <add>, %7, %cst_7 [1] : vector<8x128xf32> to vector<8xf32>
    %9 = vector.shape_cast %8 : vector<8xf32> to vector<8x1xf32>
    %cst_8 = arith.constant 1.280000e+02 : f32
    %10 = vector.broadcast %cst_8 : f32 to vector<8x1xf32>
    %11 = arith.divf %9, %10 : vector<8x1xf32>
    %12 = vector.broadcast %11 : vector<8x1xf32> to vector<8x128xf32>
    %13 = arith.subf %7, %12 : vector<8x128xf32>
    %14 = vector.broadcast %11 : vector<8x1xf32> to vector<8x128xf32>
    %15 = arith.subf %7, %14 : vector<8x128xf32>
    %16 = arith.mulf %13, %15 : vector<8x128xf32>
    %cst_9 = arith.constant dense<0.000000e+00> : vector<8xf32>
    %17 = vector.multi_reduction <add>, %16, %cst_9 [1] : vector<8x128xf32> to vector<8xf32>
    %18 = vector.shape_cast %17 : vector<8xf32> to vector<8x1xf32>
    %cst_10 = arith.constant 1.280000e+02 : f32
    %19 = vector.broadcast %cst_10 : f32 to vector<8x1xf32>
    %20 = arith.divf %18, %19 : vector<8x1xf32>
    %c0_11 = arith.constant 0 : index
    %c0_12 = arith.constant 0 : index
    %21 = vector.load %arg5[%c0_11, %c0_12] : memref<1x128xf32, #tpu.memory_space<vmem>>, vector<1x128xf32>
    %22 = vector.broadcast %11 : vector<8x1xf32> to vector<8x128xf32>
    %23 = arith.subf %7, %22 : vector<8x128xf32>
    %cst_13 = arith.constant 9.99999996E-13 : f32
    %24 = vector.broadcast %cst_13 : f32 to vector<8x1xf32>
    %25 = arith.addf %20, %24 : vector<8x1xf32>
    %26 = math.rsqrt %25 : vector<8x1xf32>
    %27 = vector.broadcast %26 : vector<8x1xf32> to vector<8x128xf32>
    %28 = arith.mulf %23, %27 : vector<8x128xf32>
    %29 = vector.broadcast %21 : vector<1x128xf32> to vector<8x128xf32>
    %30 = arith.mulf %29, %28 : vector<8x128xf32>
    %c0_14 = arith.constant 0 : index
    %c0_15 = arith.constant 0 : index
    %31 = vector.load %arg6[%c0_14, %c0_15] : memref<1x128xf32, #tpu.memory_space<vmem>>, vector<1x128xf32>
    %32 = vector.broadcast %31 : vector<1x128xf32> to vector<8x128xf32>
    %33 = arith.addf %30, %32 : vector<8x128xf32>
    %c0_16 = arith.constant 0 : index
    %c0_17 = arith.constant 0 : index
    %34 = vector.load %arg7[%c0_16, %c0_17] : memref<8x128xf32, #tpu.memory_space<vmem>>, vector<8x128xf32>
    tpu.vector_store %arg7[%c0_16, %c0_17], %33 {strides = array<i32>} : memref<8x128xf32, #tpu.memory_space<vmem>>, vector<8x128xf32>,
    return
  }
  func.func @transform_0(%arg0: i32) -> (i32, i32) {
    %c0_i32 = arith.constant 0 : i32
    %c0_i32_0 = arith.constant 0 : i32
    return %arg0, %c0_i32 : i32, i32
  }
  func.func @transform_1(%arg0: i32) -> (i32, i32) {
    %c0_i32 = arith.constant 0 : i32
    %c0_i32_0 = arith.constant 0 : i32
    return %arg0, %c0_i32 : i32, i32
  }
  func.func @transform_2(%arg0: i32) -> (i32, i32) {
    %c0_i32 = arith.constant 0 : i32
    %c0_i32_0 = arith.constant 0 : i32
    %c0_i32_1 = arith.constant 0 : i32
    return %c0_i32, %c0_i32_0 : i32, i32
  }
  func.func @transform_3(%arg0: i32) -> (i32, i32) {
    %c0_i32 = arith.constant 0 : i32
    %c0_i32_0 = arith.constant 0 : i32
    %c0_i32_1 = arith.constant 0 : i32
    return %c0_i32, %c0_i32_0 : i32, i32
  }
  func.func @transform_4(%arg0: i32) -> (i32, i32) {
    %c0_i32 = arith.constant 0 : i32
    %c0_i32_0 = arith.constant 0 : i32
    %c0_i32_1 = arith.constant 0 : i32
    return %c0_i32, %c0_i32_0 : i32, i32
  }
  func.func @transform_5(%arg0: i32) -> (i32, i32) {
    %c0_i32 = arith.constant 0 : i32
    %c0_i32_0 = arith.constant 0 : i32
    %c0_i32_1 = arith.constant 0 : i32
    return %c0_i32, %c0_i32_0 : i32, i32
  }
  func.func @transform_6(%arg0: i32) -> (i32, i32) {
    %c0_i32 = arith.constant 0 : i32
    %c0_i32_0 = arith.constant 0 : i32
    return %arg0, %c0_i32 : i32, i32
  }
}

</mosaic_0001>

<bundles_post_ra>
// kernel: tpu_custom_call.1
= control target key start
LH: loop header
LB: loop body
LE: loop exit
PB: predicated region body
PF: predicated region fallthrough
CT: control target
= control target key end

     0   :  { %s1180_s0 = inlined_call_operand.hbm [shape: f32[16,128], index: 0, kind: input, shape index: {}]   ;;  %s1181_s1 = inlined_call_operand.hbm [shape: f32[16,128], index: 1, kind: input, shape index: {}]   ;;  %s1182_s2 = inlined_call_operand.hbm [shape: f32[128,128], index: 2, kind: input, shape index: {}]   ;;  %s1183_s3 = inlined_call_operand.vmem [shape: f32[1,128], index: 3, kind: input, shape index: {}]   ;;  %s1184_s4 = inlined_call_operand.vmem [shape: f32[1,128], index: 4, kind: input, shape index: {}]   ;;  %s1185_s5 = inlined_call_operand.vmem [shape: f32[1,128], index: 5, kind: input, shape index: {}]   ;;  %s1186_s6 = inlined_call_operand.hbm [shape: f32[16,128], index: 6, kind: output, shape index: {}]  }
   0x1   :  { %1192 = sst [smem:[#allocation15_spill]] %s1182_s2 }
   0x2   :  { %11 = vsyncpa [#allocation3], 0 }
   0x3   :  { %13 = vsyncpa [#allocation3 + $0x1], 0 }
   0x4   :  { %14 = vsyncpa [#allocation6], 0 }
   0x5   :  { %16 = vsyncpa [#allocation6 + $0x1], 0 }
   0x6   :  { %17 = vsyncpa [#allocation4], 0 }
   0x7   :  { %19 = vsyncpa [#allocation4 + $0x1], 0  ;;  %s932_s21 = smov 0   ;;  %s934_s22 = smov 0  }
   0x8   :  { %s936_s23 = smov 0   ;;  %s938_s24 = smov 0  }
   0x9 LB: > { %1193 = sst [smem:[#allocation13_spill]] %s882_s23  ;;  %s953_s25 = sadd.s32 4294967295, %s886_s24   ;;  %s886_s24 = sphi %s938_s24, %s1215_s24   ;;  %s882_s23 = sphi %s936_s23, %s1214_s23   ;;  %s878_s22 = sphi %s934_s22, %s1213_s22   ;;  %s874_s21 = sphi %s932_s21, %s1212_s21  }
   0xa   : > { %s559_s26 = sadd.s32 4294967294, %s886_s24   ;;  %p45_p0 = scmp.ne.s32.totalorder %s878_s22, %s874_s21 }
   0xb   : > { %p1187_p1 = scmp.eq.s32.totalorder %s953_s25, 0  ;;  %p185_p3 = scmp.eq.s32.totalorder %s559_s26, 1 }
   0xc   : > { %p560_p5 = scmp.ge.s32.totalorder %s886_s24, 1  ;;  %p192_p7 = scmp.lt.s32.totalorder %s886_s24, 3 }
   0xd   : > { %p962_p4 = por %p1187_p1, %p45_p0  ;;  %p967_p6 = por %p185_p3, %p45_p0 }
   0xe   : > { %p972_p8 = pnand %p560_p5, %p192_p7  ;;  %s888_s30 = smov [#allocation7]  }
   0xf   : > { %s1194_s27 = scalar_select %p962_p4, 1, 0 }
  0x10   : > { %s1195_s28 = scalar_select %p967_p6, 1, 0 }
  0x11   : > { %s1196_s29 = scalar_select %p972_p8, 1, 0 }
  0x12   : > { %s204_s7 = sshll.u32 %s888_s30, 4  ;;  %p665_p9 = pneg %p972_p8  ;;  %s976_s7 = int_to_ptr.vmem [resolvable:$true] %s204_s7 }
  0x13   : > { %s988_s9 = sadd.s32 1, %s886_s24   ;;  %s32_s10 = sadd.s32 1, %s882_s23 }
  0x14   : > { %p983_p11 = pnand %p665_p9, %p1187_p1  ;;  %s29_s11 = ssub.s32 %s886_s24, %s988_s9 }
  0x15   : > { %s1198_s2 = sld [smem:[#allocation15_spill]] }
  0x16   : > { %p726_p13 = pneg %p983_p11 }
  0x1b   : > { %s724_s14 = scalar_lea.hbm %s1198_s2, 2048 }
  0x1c   : > { %p725_p12 = scmp.ne.s32.totalorder %s1198_s2, %s724_s14  ;;  %p731_p5 = scmp.lt.u32.totalorder %s724_s14, %s1198_s2 }
  0x1e   : > { %p727_p0 = pnand %p726_p13, %p725_p12 }
  0x20   : > { %p728_p3 = pneg %p727_p0 }
  0x22   : > { %p733_p7 = pnand %p731_p5, %p728_p3 }
  0x24   : > { %736 = shalt.err (!%p733_p7)
}
  0x25   : > { %s737_s19 = scalar_lea.vmem %s976_s7, 2048  ;;  %p745_p2 = scmp.lt.s32.totalorder %s976_s7, %s976_s7 }
  0x26   : > { %p738_p9 = scmp.ne.s32.totalorder %s976_s7, %s737_s19  ;;  %p746_p6 = scmp.lt.s32.totalorder %s737_s19, %s737_s19 }
  0x28   : > { %p740_p10 = pnand %p738_p9, %p726_p13  ;;  %p747_p4 = por %p746_p6, %p745_p2 }
  0x2a   : > { %p741_p1 = pneg %p740_p10 }
  0x2c   : > { %p748_p8 = pnand %p747_p4, %p741_p1 }
  0x2e   : > { %751 = shalt.err (!%p748_p8)
}
  0x2f   : > { %s889_s20 = smov 128   ;;  %s890_s26 = smov 8  }
  0x30   : > { %668 = dma.hbm_to_vmem [thread:$0]  (!%p983_p11), %s1198_s2, 2048, %s976_s7, [#allocation6], %s889_s20, %s889_s20, %s890_s26  }
  0x31   : > { %p30_p2 = scmp.eq.s32.totalorder %s29_s11, 0  ;;  %p39_p1 = scmp.ne.s32.totalorder %s882_s23, %s878_s22 }
  0x32   : > { %p40_p4 = scmp.eq.s32.totalorder %s886_s24, 0  ;;  %p681_p6 = scmp.lt.s32.totalorder %s886_s24, 2 }
  0x33   : > { %s1019_s13 = scalar_select %p30_p2, %s882_s23, %s32_s10  }
  0x34   : > { %p41_p8 = por %p40_p4, %p39_p1  ;;  %p1200_p10 = scmp.eq.s32.totalorder %s953_s25, 1 }
  0x35   : > { %1199 = sst [smem:[#allocation14_spill]] %s1019_s13  ;;  %s227_s15 = sand.u32 1, %s882_s23  }
  0x36   : > { %p1023_p12 = por %p1200_p10, %p39_p1  ;;  %s564_s16 = sshll.u32 %s886_s24, 7 }
  0x37   : > { %s1029_s17 = sshll.u32 %s227_s15, 3  ;;  %s1034_s7 = scalar_lea.hbm %s1180_s0, %s564_s16 }
  0x38   : > { %s1201_s14 = scalar_select %p1023_p12, 1, 0 }
  0x39   : > { %s231_s10 = scalar_lea.vmem [#allocation2], %s1029_s17  ;;  %p1037_p11 = pnand %p681_p6, %p41_p8 }
  0x3a   : > { %s238_s11 = sshll.u32 %s231_s10, 4  ;;  %s1046_s30 = scalar_lea.hbm %s1181_s1, %s564_s16  ;;  %s1041_s11 = int_to_ptr.vmem [resolvable:$true] %s238_s11 }
  0x3b   : > { %s228_s12 = scalar_lea.sflag [#allocation3], %s227_s15  ;;  %s752_s8 = scalar_lea.hbm %s1034_s7, 128 }
  0x3c   : > { %p753_p13 = scmp.ne.s32.totalorder %s1034_s7, %s752_s8  ;;  %p754_p0 = pneg %p1037_p11 }
  0x3d   : > { %s757_s2 = scalar_lea.hbm %s1180_s0, 256  ;;  %p758_p7 = scmp.lt.u32.totalorder %s1034_s7, %s1180_s0 }
  0x3e   : > { %p755_p3 = pnand %p754_p0, %p753_p13  ;;  %p759_p9 = scmp.lt.u32.totalorder %s757_s2, %s752_s8 }
  0x3f   : > { %p761_p1 = scmp.lt.u32.totalorder %s752_s8, %s1034_s7 }
  0x40   : > { %p756_p5 = pneg %p755_p3  ;;  %p760_p2 = por %p759_p9, %p758_p7 }
  0x42   : > { %p762_p4 = por %p761_p1, %p760_p2 }
  0x44   : > { %p763_p6 = pnand %p762_p4, %p756_p5 }
  0x46   : > { %766 = shalt.err (!%p763_p6)
}
  0x47   : > { %s767_s15 = scalar_lea.vmem %s1041_s11, 128  ;;  %s891_s16 = smov [#allocation2]  }
  0x48   : > { %p768_p8 = scmp.ne.s32.totalorder %s1041_s11, %s767_s15  ;;  %s772_s20 = sshll.u32 %s891_s16, 4  ;;  %s773_s20 = int_to_ptr.vmem [resolvable:$false] %s772_s20 }
  0x49   : > { %s774_s23 = scalar_lea.vmem %s773_s20, 256  ;;  %p775_p3 = scmp.lt.s32.totalorder %s1041_s11, %s773_s20 }
  0x4a   : > { %p770_p10 = pnand %p768_p8, %p754_p0  ;;  %p776_p7 = scmp.lt.s32.totalorder %s774_s23, %s767_s15 }
  0x4c   : > { %p771_p13 = pneg %p770_p10  ;;  %p777_p9 = por %p776_p7, %p775_p3 }
  0x4e   : > { %p778_p2 = pnand %p777_p9, %p771_p13 }
  0x50   : > { %781 = shalt.err (!%p778_p2)
}
  0x51   : > { %672 = dma.hbm_to_vmem [thread:$0]  (!%p1037_p11), %s1034_s7, 128, %s1041_s11, %s228_s12  }
  0x52   : > { %s245_s2 = sand.u32 1, %s886_s24   ;;  %s249_s13 = scalar_lea.vmem [#allocation5], %s1029_s17 }
  0x53   : > { %s256_s26 = sshll.u32 %s249_s13, 4  ;;  %s246_s8 = scalar_lea.sflag [#allocation6], %s245_s2  ;;  %s257_s26 = int_to_ptr.vmem [resolvable:$true] %s256_s26 }
  0x54   : > { %s782_s18 = scalar_lea.hbm %s1046_s30, 128  ;;  %s787_s16 = scalar_lea.hbm %s1181_s1, 256 }
  0x55   : > { %p783_p5 = scmp.ne.s32.totalorder %s1046_s30, %s782_s18  ;;  %p788_p6 = scmp.lt.u32.totalorder %s1046_s30, %s1181_s1 }
  0x56   : > { %p789_p8 = scmp.lt.u32.totalorder %s787_s16, %s782_s18  ;;  %p791_p13 = scmp.lt.u32.totalorder %s782_s18, %s1046_s30 }
  0x57   : > { %p785_p1 = pnand %p783_p5, %p754_p0 }
  0x58   : > { %p790_p10 = por %p789_p8, %p788_p6 }
  0x59   : > { %p786_p4 = pneg %p785_p1 }
  0x5a   : > { %p792_p3 = por %p791_p13, %p790_p10 }
  0x5c   : > { %p793_p7 = pnand %p792_p3, %p786_p4 }
  0x5e   : > { %796 = shalt.err (!%p793_p7)
}
  0x5f   : > { %s797_s17 = scalar_lea.vmem %s257_s26, 128  ;;  %s892_s7 = smov [#allocation5]  }
  0x60   : > { %p798_p9 = scmp.ne.s32.totalorder %s257_s26, %s797_s17  ;;  %s802_s11 = sshll.u32 %s892_s7, 4  ;;  %s803_s11 = int_to_ptr.vmem [resolvable:$false] %s802_s11 }
  0x61   : > { %s804_s12 = scalar_lea.vmem %s803_s11, 256  ;;  %p805_p1 = scmp.lt.s32.totalorder %s257_s26, %s803_s11 }
  0x62   : > { %p800_p2 = pnand %p798_p9, %p754_p0  ;;  %p806_p12 = scmp.lt.s32.totalorder %s804_s12, %s797_s17 }
  0x64   : > { %p801_p5 = pneg %p800_p2  ;;  %p807_p6 = por %p806_p12, %p805_p1 }
  0x66   : > { %p808_p8 = pnand %p807_p6, %p801_p5 }
  0x68   : > { %811 = shalt.err (!%p808_p8)
}
  0x69   : > { %675 = dma.hbm_to_vmem [thread:$0]  (!%p1037_p11), %s1046_s30, 128, %s257_s26, %s246_s8  }
  0x6a   : > { %p1203_p4 = scmp.ne.s32.totalorder %s1196_s29, 0 }
  0x6b   : > { %s1097_s2 = sand.u32 (!%p1203_p4), 1, %s878_s22   ;;  %p1204_p12 = scmp.ne.s32.totalorder (!%p1203_p4), %s1194_s27, 0 }
  0x6c   : > { %265 = sbr.rel (%p1203_p4) target bundleno = 697 (0x2b9), region = 44  ;;  %s1100_s13 = sshll.u32 (!%p1203_p4), %s1097_s2, 3 }
  0x6d   : > { %s268_s18 = scalar_lea.sflag (!%p1203_p4), [#allocation3], %s1097_s2  ;;  %s271_s10 = scalar_lea.vmem (!%p1203_p4), [#allocation2], %s1100_s13 }
  0x73   : > { %857 = dma.done.wait (%p1204_p12), %s268_s18, 128  }
  0x74   : > { %859 = vsyncadd (%p1204_p12), %s268_s18, 4294967168  ;;  %s276_s29 = sand.u32 1, %s953_s25   ;;  %s280_s30 = scalar_lea.vmem [#allocation5], %s1100_s13 }
  0x75   : > { %s277_s19 = scalar_lea.sflag [#allocation6], %s276_s29 }
  0x76   : > { %861 = dma.done.wait (%p1204_p12), %s277_s19, 128  }
  0x77   : > { %863 = vsyncadd (%p1204_p12), %s277_s19, 4294967168  ;;  %p1205_p11 = scmp.eq.s32.totalorder %s953_s25, 0 }
  0x79   : > { %865 = dma.done.wait (%p1205_p11), [#allocation6], 2048   ;;  %p1206_p0 = pmov %p1205_p11 }
  0x7a   : > { %v893_v0 = vmov 0.0|0.0   ;;  %vm894_vm0 = vmmov 0   ;;  %v895_v1 = vmov 0.0   ;;  %v319_v2 = vld [vmem:[#allocation7] sm:$0xff]  ;;  %v320_v3 = vld [vmem:[#allocation7 + $0x8] sm:$0xff]  ;;  %v321_v4 = vld [vmem:[#allocation7 + $0x10] sm:$0xff] }
  0x7b   : > { %867 = vsyncadd (%p1206_p0), [#allocation6], 4294965248  ;;  %631 = vmatprep.subr.bf16.mxu0 %v893_v0  ;;  %628 = vmatprep.mubr.msk.f32.mxu0 %vm894_vm0, %v895_v1  ;;  %v632_v5 = vpack.c.bf16 %v320_v3, %v319_v2  ;;  %v322_v6 = vld [vmem:[#allocation7 + $0x18] sm:$0xff]  ;;  %v323_v8 = vld [vmem:[#allocation7 + $0x20] sm:$0xff]  ;;  %s576_s23 = sshll.u32 %s953_s25, 7  ;;  %s317_s17 = scalar_lea.vmem [#allocation8], %s1100_s13 }
  0x7c   : > { %v635_v7 = vpack.c.bf16 %v322_v6, %v321_v4  ;;  %v324_v9 = vld [vmem:[#allocation7 + $0x28] sm:$0xff]  ;;  %v325_v11 = vld [vmem:[#allocation7 + $0x30] sm:$0xff]  ;;  %v326_v12 = vld [vmem:[#allocation7 + $0x38] sm:$0xff]  ;;  %s457_s7 = sshll.u32 %s317_s17, 4  ;;  %s1136_s18 = scalar_lea.hbm %s1186_s6, %s576_s23  ;;  %s1138_s7 = int_to_ptr.vmem [resolvable:$true] %s457_s7 }
  0x7d   : > { %633 = vmatpush3.bf16.msra.mxu0 %v632_v5  ;;  %v638_v10 = vpack.c.bf16 %v324_v9, %v323_v8  ;;  %v641_v13 = vpack.c.bf16 %v326_v12, %v325_v11  ;;  %v327_v14 = vld [vmem:[#allocation7 + $0x40] sm:$0xff]  ;;  %v328_v15 = vld [vmem:[#allocation7 + $0x48] sm:$0xff]  ;;  %v329_v17 = vld [vmem:[#allocation7 + $0x50] sm:$0xff]  ;;  %s812_s29 = scalar_lea.vmem %s1138_s7, 128  ;;  %p1207_p13 = scmp.ne.s32.totalorder %s1201_s14, 0 }
  0x7e   : > { %634 = vmatprep.subr.bf16.mxu0 %v893_v0  ;;  %v644_v16 = vpack.c.bf16 %v328_v15, %v327_v14  ;;  %v330_v18 = vld [vmem:[#allocation7 + $0x58] sm:$0xff]  ;;  %v331_v20 = vld [vmem:[#allocation7 + $0x60] sm:$0xff]  ;;  %v332_v21 = vld [vmem:[#allocation7 + $0x68] sm:$0xff]  ;;  %p813_p10 = scmp.ne.s32.totalorder %s1138_s7, %s812_s29  ;;  %s896_s25 = smov [#allocation8]  }
  0x7f   : > { %v647_v19 = vpack.c.bf16 %v330_v18, %v329_v17  ;;  %v650_v22 = vpack.c.bf16 %v332_v21, %v331_v20  ;;  %v333_v23 = vld [vmem:[#allocation7 + $0x70] sm:$0xff]  ;;  %v334_v24 = vld [vmem:[#allocation7 + $0x78] sm:$0xff]  ;;  %v318_v26 = vld [vmem:[%s271_s10] sm:$0xff]  ;;  %s444_s10 = scalar_lea.sflag [#allocation4], %s1097_s2  ;;  %s816_s13 = sshll.u32 %s896_s25, 4  ;;  %s817_s13 = int_to_ptr.vmem [resolvable:$false] %s816_s13 }
  0x80   : > { %v653_v25 = vpack.c.bf16 %v334_v24, %v333_v23  ;;  %v572_v27 = vld [vmem:[%s1183_s3] ss:$0 sm:$0xff]  ;;  %v412_v29 = vld [vmem:[%s280_s30] sm:$0xff]  ;;  %p814_p3 = pnand %p813_p10, %p1207_p13  ;;  %s818_s19 = scalar_lea.vmem %s817_s13, 256 }
  0x81   : > { %636 = vmatpush3.bf16.msra.mxu0 %v635_v7  ;;  %v573_v41 = vld [vmem:[%s1184_s4] ss:$0 sm:$0xff]  ;;  %p819_p9 = scmp.lt.s32.totalorder %s1138_s7, %s817_s13  ;;  %p820_p2 = scmp.lt.s32.totalorder %s818_s19, %s812_s29 }
  0x82   : > { %637 = vmatprep.subr.bf16.mxu0 %v893_v0  ;;  %v574_v43 = vld [vmem:[%s1185_s5] ss:$0 sm:$0xff]  ;;  %p815_p7 = pneg %p814_p3 }
  0x83   : > { %p821_p5 = por %p820_p2, %p819_p9 }
  0x85   : > { %639 = vmatpush3.bf16.msra.mxu0 %v638_v10  ;;  %p822_p1 = pnand %p821_p5, %p815_p7 }
  0x86   : > { %640 = vmatprep.subr.bf16.mxu0 %v893_v0 }
  0x89   : > { %642 = vmatpush3.bf16.msra.mxu0 %v641_v13 }
  0x8a   : > { %643 = vmatprep.subr.bf16.mxu0 %v893_v0 }
  0x8d   : > { %645 = vmatpush3.bf16.msra.mxu0 %v644_v16 }
  0x8e   : > { %646 = vmatprep.subr.bf16.mxu0 %v893_v0 }
  0x91   : > { %648 = vmatpush3.bf16.msra.mxu0 %v647_v19 }
  0x92   : > { %649 = vmatprep.subr.bf16.mxu0 %v893_v0 }
  0x95   : > { %651 = vmatpush3.bf16.msra.mxu0 %v650_v22 }
  0x96   : > { %652 = vmatprep.subr.bf16.mxu0 %v893_v0 }
  0x99   : > { %654 = vmatpush3.bf16.msra.mxu0 %v653_v25 }
  0x9c   : > { %629 = vmatmul.mubr.f32.vlgmr.msra.gmra.mrb[0].mxu0 %v318_v26 }
 0x16f   : > { %v408_v28 = vpop.f32.mrb[0].mxu0 }
 0x170   : > { %v409_v30 = vadd.f32 %v572_v27, %v408_v28  ;;  %v630_v31 = vpop.f32.mrb[1].mxu0 }
 0x172   : > { %v413_v32 = vadd.f32 %v412_v29, %v409_v30 }
 0x174   : > { %414 = vadd.xlane.f32.xlu0 %v413_v32 }
 0x201   : > { %v415_v33 = vpop.xlane.xlu0 %414 }
 0x202   : > { %v417_v34 = vmul.f32 0.0078125, %v415_v33 }
 0x204   : > { %v418_v35 = vsub.f32 %v413_v32, %v417_v34 }
 0x206   : > { %v419_v36 = vmul.f32 %v418_v35, %v418_v35 }
 0x208   : > { %420 = vadd.xlane.f32.xlu0 %v419_v36 }
 0x295   : > { %v421_v37 = vpop.xlane.xlu0 %420 }
 0x296   : > { %v422_v38 = vmul.f32 0.0078125, %v421_v37 }
 0x298   : > { %v424_v39 = vadd.f32 1e-12, %v422_v38 }
 0x29a   : > { %722 = vrsqrt.f32 %v424_v39 }
 0x2a4   : > { %v723_v40 = vpop.eup %722 }
 0x2a5   : > { %v426_v42 = vmul.f32 %v723_v40, %v418_v35 }
 0x2a7   : > { %v433_v44 = vmul.f32 %v573_v41, %v426_v42 }
 0x2a9   : > { %v441_v45 = vadd.f32 %v574_v43, %v433_v44 }
 0x2ab   : > { %442 = vst [vmem:[%s317_s17] sm:$0xff] %v441_v45 }
 0x2ac   : > { %825 = shalt.err (!%p822_p1)
}
 0x2ad   : > { %s826_s2 = scalar_lea.hbm %s1136_s18, 128  ;;  %s830_s26 = scalar_lea.hbm %s1186_s6, 256 }
 0x2ae   : > { %p827_p6 = scmp.ne.s32.totalorder %s1136_s18, %s826_s2  ;;  %p831_p12 = scmp.lt.u32.totalorder %s1136_s18, %s1186_s6 }
 0x2af   : > { %p832_p11 = scmp.lt.u32.totalorder %s830_s26, %s826_s2  ;;  %p834_p10 = scmp.lt.u32.totalorder %s826_s2, %s1136_s18 }
 0x2b0   : > { %p828_p8 = pnand %p827_p6, %p1207_p13 }
 0x2b1   : > { %p833_p0 = por %p832_p11, %p831_p12 }
 0x2b2   : > { %p829_p4 = pneg %p828_p8 }
 0x2b3   : > { %p835_p3 = por %p834_p10, %p833_p0 }
 0x2b5   : > { %p836_p7 = pnand %p835_p3, %p829_p4 }
 0x2b7   : > { %839 = shalt.err (!%p836_p7)
}
 0x2b8   : > { %663 = dma.vmem_to_hbm [thread:$0]  (%p1207_p13), %s1138_s7, 128, %s1136_s18, %s444_s10  }
 0x2b9 PF: > { %s469_s16 = sand.u32 1, %s874_s21   ;;  %p1208_p9 = scmp.ne.s32.totalorder %s1195_s28, 0 }
 0x2ba   : > { %p1209_p2 = scmp.ge.s32.totalorder %s886_s24, 2  ;;  %s470_s20 = scalar_lea.sflag [#allocation4], %s469_s16 }
 0x2bc   : > { %p677_p5 = pnand %p1209_p2, %p1208_p9 }
 0x2be   : > { %869 = dma.done.wait (!%p677_p5), %s470_s20, 128  }
 0x2bf   : > { %871 = vsyncadd (!%p677_p5), %s470_s20, 4294967168  ;;  %s1210_s23 = sld [smem:[#allocation13_spill]]  ;;  %s1211_s17 = sld [smem:[#allocation14_spill]] }
 0x2c0   : > { %p22_p1 = scmp.ge.s32.totalorder %s988_s9, 4   ;;  %s1212_s21 = smov %s878_s22 }
 0x2c1   : > { %s1215_s24 = smov %s988_s9 }
 0x2c2   :  { %24 = sbr.rel (!%p22_p1) target bundleno = 9 (0x9), region = 106 }
 0x2c5   : > { %s1213_s22 = smov %s1210_s23  ;;  %s1214_s23 = smov %s1211_s17 }
 0x2c9   :  { %475 = vsyncpa [#allocation3], 1 }
 0x2ca   :  { %477 = vsyncpa [#allocation3 + $0x1], 1 }
 0x2cb   :  { %478 = vsyncpa [#allocation6], 1 }
 0x2cc   :  { %480 = vsyncpa [#allocation6 + $0x1], 1 }
 0x2cd   :  { %481 = vsyncpa [#allocation4], 1 }
 0x2ce   :  { %483 = vsyncpa [#allocation4 + $0x1], 1 }

</bundles_post_ra>
